<compile_context>
chip_gen: v6e
topology: v6e:2x2x1
jax: 0.10.0
libtpu: 0.0.40
codegen_flags: <defaults>
</compile_context>

<pallas_src>
import jax
import jax.numpy as jnp
from jax.experimental import pallas as pl
from jax.experimental.pallas import tpu as pltpu


# ---------------------------------------------------------------------------
# In-kernel reflect-neighbour helpers (PyTorch/kornia 'reflect' = mirror,
# edge not repeated).  Static slices + concat along lane / sublane axes
# (handled by the XLU, leaving VALU slots for the adds).
# ---------------------------------------------------------------------------
def _next_w(a, W):
    # a[..., j+1], with j = W-1 reflecting to W-2.
    return jnp.concatenate([a[..., 1:], a[..., W - 2:W - 1]], axis=-1)


def _prev_w(a, W):
    # a[..., j-1], with j = 0 reflecting to 1.
    return jnp.concatenate([a[..., 1:2], a[..., :W - 1]], axis=-1)


def _next_h(a, H):
    return jnp.concatenate([a[..., 1:, :], a[..., H - 2:H - 1, :]], axis=-2)


def _prev_h(a, H):
    return jnp.concatenate([a[..., 1:2, :], a[..., :H - 1, :]], axis=-2)


def _sum2x2(x, H, W):
    # kornia "same" padding for k=2: pad (front, rear) = (0, 1) -> window {i, i+1}.
    s = x + _next_w(x, W)
    return s + _next_h(s, H)


def _sum3x3(x, H, W):
    # kornia "same" padding for k=3: pad (1, 1) -> window {i-1, i, i+1}.
    s = _prev_w(x, W) + x + _next_w(x, W)
    return _prev_h(s, H) + s + _next_h(s, H)


def _fused_boxblur_kernel(mask1_ref, mask2_ref, x_ref, o_ref):
    """One batch sample per grid step: out = stage2(stage1(x))."""
    n = pl.program_id(0)
    m1 = mask1_ref[n]              # int32 scalars from SMEM (scalar prefetch)
    m2 = mask2_ref[n]
    _, _, H, W = x_ref.shape       # block shape (1, C, H, W), static

    do1 = m1 != 0
    do2 = m2 != 0

    @pl.when(jnp.logical_not(do1 | do2))
    def _():
        # ~64% of samples at p=0.2: pure copy, no blur VALU work at all.
        o_ref[...] = x_ref[...]

    @pl.when(do1 & jnp.logical_not(do2))
    def _():
        x = x_ref[...].astype(jnp.float32)
        o_ref[...] = (_sum2x2(x, H, W) * 0.25).astype(o_ref.dtype)

    @pl.when(jnp.logical_not(do1) & do2)
    def _():
        x = x_ref[...].astype(jnp.float32)
        o_ref[...] = (_sum3x3(x, H, W) * (1.0 / 9.0)).astype(o_ref.dtype)

    @pl.when(do1 & do2)
    def _():
        x = x_ref[...].astype(jnp.float32)
        # Normalizations fused: scaling by a constant commutes with the
        # reflect shifts, so blur3(blur2(x)) == sum3x3(sum2x2(x)) / 36.
        out = _sum3x3(_sum2x2(x, H, W), H, W) * (1.0 / 36.0)
        o_ref[...] = out.astype(o_ref.dtype)


def _fused_random_box_blur(x, mask1, mask2):
    """x: (N,C,H,W); mask1/mask2: (N,) bool — per-sample selection per stage."""
    N, C, H, W = x.shape
    assert H >= 2 and W >= 2, "reflect padding needs H, W >= 2"

    grid_spec = pltpu.PrefetchScalarGridSpec(
        num_scalar_prefetch=2,
        grid=(N,),
        in_specs=[pl.BlockSpec((1, C, H, W), lambda n, m1, m2: (n, 0, 0, 0))],
        out_specs=pl.BlockSpec((1, C, H, W), lambda n, m1, m2: (n, 0, 0, 0)),
    )
    # NOTE: (1, C, H, W) blocks keep the double-buffered footprint tiny.  For
    # real image sizes, prefer W a multiple of 128 (lane-dense stores).
    return pl.pallas_call(
        _fused_boxblur_kernel,
        out_shape=jax.ShapeDtypeStruct((N, C, H, W), x.dtype),
        grid_spec=grid_spec,
        compiler_params=pltpu.CompilerParams(
            dimension_semantics=("parallel",),
            vmem_limit_bytes=32 * 1024 * 1024,
        ),
    )(mask1.astype(jnp.int32), mask2.astype(jnp.int32), x)


def data_augmentation_forward(x, key, apply_color_jitter=False):
    """Equivalent of DataAugmentation.forward (no_grad, inference math only)."""
    N = x.shape[0]
    k1, k2 = jax.random.split(key)
    mask1 = jax.random.bernoulli(k1, p=0.2, shape=(N,))   # RandomBoxBlur(2x2) selection
    mask2 = jax.random.bernoulli(k2, p=0.2, shape=(N,))   # RandomBoxBlur(3x3) selection
    out = _fused_random_box_blur(x, mask1, mask2)
    # TODO(synk): apply_color_jitter branch (self.jitter) is undefined in the
    # reference nn.Module; only implemented for apply_color_jitter=False.
    return out


# Pure-JAX reference (kornia box_blur semantics) for correctness checking.
def _reference(x, mask1, mask2):
    def blur(y, kh, kw):
        H, W = y.shape[2], y.shape[3]
        ph_f, ph_r = (kh - 1) // 2, (kh - 1) - (kh - 1) // 2
        pw_f, pw_r = (kw - 1) // 2, (kw - 1) - (kw - 1) // 2
        yp = jnp.pad(y, ((0, 0), (0, 0), (ph_f, ph_r), (pw_f, pw_r)), mode="reflect")
        acc = jnp.zeros_like(y)
        for i in range(kh):
            for j in range(kw):
                acc = acc + yp[:, :, i:i + H, j:j + W]
        return acc / float(kh * kw)

    m1 = mask1.reshape(-1, 1, 1, 1)
    m2 = mask2.reshape(-1, 1, 1, 1)
    x1 = jnp.where(m1, blur(x, 2, 2), x)
    return jnp.where(m2, blur(x1, 3, 3), x1)


if __name__ == "__main__":
    key = jax.random.PRNGKey(0)
    k_x, k_aug = jax.random.split(key)

    # Small NCHW input consistent with an image-augmentation module.
    x = jax.random.uniform(k_x, (2, 4, 16, 16), dtype=jnp.float32)

    # Module-equivalent forward (masks drawn internally, p=0.2 each stage).
    out = jax.block_until_ready(data_augmentation_forward(x, k_aug))
    assert out.shape == x.shape and out.dtype == x.dtype

    # Exercise every mask path (skip / 2x2 only / 3x3 only / both) and verify
    # against the pure-JAX reference.
    for m1_vals, m2_vals in [((True, False), (False, True)),
                             ((True, True), (True, True)),
                             ((False, False), (False, False))]:
        m1 = jnp.array(m1_vals)
        m2 = jnp.array(m2_vals)
        got = jax.block_until_ready(_fused_random_box_blur(x, m1, m2))
        ref = _reference(x, m1, m2)
        assert jnp.allclose(got, ref, atol=1e-5, rtol=1e-5), float(
            jnp.max(jnp.abs(got - ref)))

    print("KERNEL_OK")
</pallas_src>

<mosaic_0001>
module attributes {stable_mosaic.version = 11 : i64} {
  func.func @_fused_boxblur_kernel(%arg0: i32, %arg1: memref<2xi32, #tpu.memory_space<smem>>, %arg2: memref<2xi32, #tpu.memory_space<smem>>, %arg3: memref<1x4x16x16xf32, #tpu.memory_space<vmem>>, %arg4: memref<1x4x16x16xf32, #tpu.memory_space<vmem>>) attributes {dimension_semantics = [#tpu.dimension_semantics<parallel>], iteration_bounds = array<i64: 2>, scalar_prefetch = 2 : i64, scratch_operands = 0 : i64, tpu.core_type = #tpu.core_type<tc>, window_params = [{transform_indices = @transform_0, window_bounds = array<i64: 1, 4, 16, 16>}, {transform_indices = @transform_1, window_bounds = array<i64: 1, 4, 16, 16>}]} {
    %0 = arith.index_cast %arg0 : i32 to index
    %1 = memref.load %arg1[%0] : memref<2xi32, #tpu.memory_space<smem>>
    %2 = arith.index_cast %arg0 : i32 to index
    %3 = memref.load %arg2[%2] : memref<2xi32, #tpu.memory_space<smem>>
    %c0_i32 = arith.constant 0 : i32
    %4 = arith.cmpi ne, %1, %c0_i32 : i32
    %c0_i32_0 = arith.constant 0 : i32
    %5 = arith.cmpi ne, %3, %c0_i32_0 : i32
    %6 = arith.ori %4, %5 : i1
    %true = arith.constant true
    %7 = arith.xori %6, %true : i1
    %8 = arith.extui %7 : i1 to i32
    %c0_i32_1 = arith.constant 0 : i32
    %9 = arith.cmpi ne, %8, %c0_i32_1 : i32
    scf.if %9 {
      %c0 = arith.constant 0 : index
      %c0_7 = arith.constant 0 : index
      %c0_8 = arith.constant 0 : index
      %c0_9 = arith.constant 0 : index
      %21 = vector.load %arg3[%c0, %c0_7, %c0_8, %c0_9] : memref<1x4x16x16xf32, #tpu.memory_space<vmem>>, vector<1x4x16x16xf32>
      %c0_10 = arith.constant 0 : index
      %c0_11 = arith.constant 0 : index
      %c0_12 = arith.constant 0 : index
      %c0_13 = arith.constant 0 : index
      %22 = vector.load %arg4[%c0_10, %c0_11, %c0_12, %c0_13] : memref<1x4x16x16xf32, #tpu.memory_space<vmem>>, vector<1x4x16x16xf32>
      tpu.vector_store %arg4[%c0_10, %c0_11, %c0_12, %c0_13], %21 {strides = array<i32>} : memref<1x4x16x16xf32, #tpu.memory_space<vmem>>, vector<1x4x16x16xf32>,
    } else {
    }
    %true_2 = arith.constant true
    %10 = arith.xori %5, %true_2 : i1
    %11 = arith.andi %4, %10 : i1
    %12 = arith.extui %11 : i1 to i32
    %c0_i32_3 = arith.constant 0 : i32
    %13 = arith.cmpi ne, %12, %c0_i32_3 : i32
    scf.if %13 {
      %c0 = arith.constant 0 : index
      %c0_7 = arith.constant 0 : index
      %c0_8 = arith.constant 0 : index
      %c0_9 = arith.constant 0 : index
      %21 = vector.load %arg3[%c0, %c0_7, %c0_8, %c0_9] : memref<1x4x16x16xf32, #tpu.memory_space<vmem>>, vector<1x4x16x16xf32>
      %22 = vector.extract_strided_slice %21 {offsets = [0, 0, 0, 1], sizes = [1, 4, 16, 15], strides = [1, 1, 1, 1]} : vector<1x4x16x16xf32> to vector<1x4x16x15xf32>
      %23 = vector.extract_strided_slice %21 {offsets = [0, 0, 0, 14], sizes = [1, 4, 16, 1], strides = [1, 1, 1, 1]} : vector<1x4x16x16xf32> to vector<1x4x16x1xf32>
      %24 = tpu.concatenate %22, %23 in 3 : vector<1x4x16x15xf32>, vector<1x4x16x1xf32> -> vector<1x4x16x16xf32>
      %25 = arith.addf %21, %24 : vector<1x4x16x16xf32>
      %26 = vector.extract_strided_slice %25 {offsets = [0, 0, 1, 0], sizes = [1, 4, 15, 16], strides = [1, 1, 1, 1]} : vector<1x4x16x16xf32> to vector<1x4x15x16xf32>
      %27 = vector.extract_strided_slice %25 {offsets = [0, 0, 14, 0], sizes = [1, 4, 1, 16], strides = [1, 1, 1, 1]} : vector<1x4x16x16xf32> to vector<1x4x1x16xf32>
      %28 = tpu.concatenate %26, %27 in 2 : vector<1x4x15x16xf32>, vector<1x4x1x16xf32> -> vector<1x4x16x16xf32>
      %29 = arith.addf %25, %28 : vector<1x4x16x16xf32>
      %cst = arith.constant 2.500000e-01 : f32
      %30 = vector.broadcast %cst : f32 to vector<1x4x16x16xf32>
      %31 = arith.mulf %29, %30 : vector<1x4x16x16xf32>
      %c0_10 = arith.constant 0 : index
      %c0_11 = arith.constant 0 : index
      %c0_12 = arith.constant 0 : index
      %c0_13 = arith.constant 0 : index
      %32 = vector.load %arg4[%c0_10, %c0_11, %c0_12, %c0_13] : memref<1x4x16x16xf32, #tpu.memory_space<vmem>>, vector<1x4x16x16xf32>
      tpu.vector_store %arg4[%c0_10, %c0_11, %c0_12, %c0_13], %31 {strides = array<i32>} : memref<1x4x16x16xf32, #tpu.memory_space<vmem>>, vector<1x4x16x16xf32>,
    } else {
    }
    %true_4 = arith.constant true
    %14 = arith.xori %4, %true_4 : i1
    %15 = arith.andi %14, %5 : i1
    %16 = arith.extui %15 : i1 to i32
    %c0_i32_5 = arith.constant 0 : i32
    %17 = arith.cmpi ne, %16, %c0_i32_5 : i32
    scf.if %17 {
      %c0 = arith.constant 0 : index
      %c0_7 = arith.constant 0 : index
      %c0_8 = arith.constant 0 : index
      %c0_9 = arith.constant 0 : index
      %21 = vector.load %arg3[%c0, %c0_7, %c0_8, %c0_9] : memref<1x4x16x16xf32, #tpu.memory_space<vmem>>, vector<1x4x16x16xf32>
      %22 = vector.extract_strided_slice %21 {offsets = [0, 0, 0, 1], sizes = [1, 4, 16, 1], strides = [1, 1, 1, 1]} : vector<1x4x16x16xf32> to vector<1x4x16x1xf32>
      %23 = vector.extract_strided_slice %21 {offsets = [0, 0, 0, 0], sizes = [1, 4, 16, 15], strides = [1, 1, 1, 1]} : vector<1x4x16x16xf32> to vector<1x4x16x15xf32>
      %24 = tpu.concatenate %22, %23 in 3 : vector<1x4x16x1xf32>, vector<1x4x16x15xf32> -> vector<1x4x16x16xf32>
      %25 = arith.addf %24, %21 : vector<1x4x16x16xf32>
      %26 = vector.extract_strided_slice %21 {offsets = [0, 0, 0, 1], sizes = [1, 4, 16, 15], strides = [1, 1, 1, 1]} : vector<1x4x16x16xf32> to vector<1x4x16x15xf32>
      %27 = vector.extract_strided_slice %21 {offsets = [0, 0, 0, 14], sizes = [1, 4, 16, 1], strides = [1, 1, 1, 1]} : vector<1x4x16x16xf32> to vector<1x4x16x1xf32>
      %28 = tpu.concatenate %26, %27 in 3 : vector<1x4x16x15xf32>, vector<1x4x16x1xf32> -> vector<1x4x16x16xf32>
      %29 = arith.addf %25, %28 : vector<1x4x16x16xf32>
      %30 = vector.extract_strided_slice %29 {offsets = [0, 0, 1, 0], sizes = [1, 4, 1, 16], strides = [1, 1, 1, 1]} : vector<1x4x16x16xf32> to vector<1x4x1x16xf32>
      %31 = vector.extract_strided_slice %29 {offsets = [0, 0, 0, 0], sizes = [1, 4, 15, 16], strides = [1, 1, 1, 1]} : vector<1x4x16x16xf32> to vector<1x4x15x16xf32>
      %32 = tpu.concatenate %30, %31 in 2 : vector<1x4x1x16xf32>, vector<1x4x15x16xf32> -> vector<1x4x16x16xf32>
      %33 = arith.addf %32, %29 : vector<1x4x16x16xf32>
      %34 = vector.extract_strided_slice %29 {offsets = [0, 0, 1, 0], sizes = [1, 4, 15, 16], strides = [1, 1, 1, 1]} : vector<1x4x16x16xf32> to vector<1x4x15x16xf32>
      %35 = vector.extract_strided_slice %29 {offsets = [0, 0, 14, 0], sizes = [1, 4, 1, 16], strides = [1, 1, 1, 1]} : vector<1x4x16x16xf32> to vector<1x4x1x16xf32>
      %36 = tpu.concatenate %34, %35 in 2 : vector<1x4x15x16xf32>, vector<1x4x1x16xf32> -> vector<1x4x16x16xf32>
      %37 = arith.addf %33, %36 : vector<1x4x16x16xf32>
      %cst = arith.constant 0.111111112 : f32
      %38 = vector.broadcast %cst : f32 to vector<1x4x16x16xf32>
      %39 = arith.mulf %37, %38 : vector<1x4x16x16xf32>
      %c0_10 = arith.constant 0 : index
      %c0_11 = arith.constant 0 : index
      %c0_12 = arith.constant 0 : index
      %c0_13 = arith.constant 0 : index
      %40 = vector.load %arg4[%c0_10, %c0_11, %c0_12, %c0_13] : memref<1x4x16x16xf32, #tpu.memory_space<vmem>>, vector<1x4x16x16xf32>
      tpu.vector_store %arg4[%c0_10, %c0_11, %c0_12, %c0_13], %39 {strides = array<i32>} : memref<1x4x16x16xf32, #tpu.memory_space<vmem>>, vector<1x4x16x16xf32>,
    } else {
    }
    %18 = arith.andi %4, %5 : i1
    %19 = arith.extui %18 : i1 to i32
    %c0_i32_6 = arith.constant 0 : i32
    %20 = arith.cmpi ne, %19, %c0_i32_6 : i32
    scf.if %20 {
      %c0 = arith.constant 0 : index
      %c0_7 = arith.constant 0 : index
      %c0_8 = arith.constant 0 : index
      %c0_9 = arith.constant 0 : index
      %21 = vector.load %arg3[%c0, %c0_7, %c0_8, %c0_9] : memref<1x4x16x16xf32, #tpu.memory_space<vmem>>, vector<1x4x16x16xf32>
      %22 = vector.extract_strided_slice %21 {offsets = [0, 0, 0, 1], sizes = [1, 4, 16, 15], strides = [1, 1, 1, 1]} : vector<1x4x16x16xf32> to vector<1x4x16x15xf32>
      %23 = vector.extract_strided_slice %21 {offsets = [0, 0, 0, 14], sizes = [1, 4, 16, 1], strides = [1, 1, 1, 1]} : vector<1x4x16x16xf32> to vector<1x4x16x1xf32>
      %24 = tpu.concatenate %22, %23 in 3 : vector<1x4x16x15xf32>, vector<1x4x16x1xf32> -> vector<1x4x16x16xf32>
      %25 = arith.addf %21, %24 : vector<1x4x16x16xf32>
      %26 = vector.extract_strided_slice %25 {offsets = [0, 0, 1, 0], sizes = [1, 4, 15, 16], strides = [1, 1, 1, 1]} : vector<1x4x16x16xf32> to vector<1x4x15x16xf32>
      %27 = vector.extract_strided_slice %25 {offsets = [0, 0, 14, 0], sizes = [1, 4, 1, 16], strides = [1, 1, 1, 1]} : vector<1x4x16x16xf32> to vector<1x4x1x16xf32>
      %28 = tpu.concatenate %26, %27 in 2 : vector<1x4x15x16xf32>, vector<1x4x1x16xf32> -> vector<1x4x16x16xf32>
      %29 = arith.addf %25, %28 : vector<1x4x16x16xf32>
      %30 = vector.extract_strided_slice %29 {offsets = [0, 0, 0, 1], sizes = [1, 4, 16, 1], strides = [1, 1, 1, 1]} : vector<1x4x16x16xf32> to vector<1x4x16x1xf32>
      %31 = vector.extract_strided_slice %29 {offsets = [0, 0, 0, 0], sizes = [1, 4, 16, 15], strides = [1, 1, 1, 1]} : vector<1x4x16x16xf32> to vector<1x4x16x15xf32>
      %32 = tpu.concatenate %30, %31 in 3 : vector<1x4x16x1xf32>, vector<1x4x16x15xf32> -> vector<1x4x16x16xf32>
      %33 = arith.addf %32, %29 : vector<1x4x16x16xf32>
      %34 = vector.extract_strided_slice %29 {offsets = [0, 0, 0, 1], sizes = [1, 4, 16, 15], strides = [1, 1, 1, 1]} : vector<1x4x16x16xf32> to vector<1x4x16x15xf32>
      %35 = vector.extract_strided_slice %29 {offsets = [0, 0, 0, 14], sizes = [1, 4, 16, 1], strides = [1, 1, 1, 1]} : vector<1x4x16x16xf32> to vector<1x4x16x1xf32>
      %36 = tpu.concatenate %34, %35 in 3 : vector<1x4x16x15xf32>, vector<1x4x16x1xf32> -> vector<1x4x16x16xf32>
      %37 = arith.addf %33, %36 : vector<1x4x16x16xf32>
      %38 = vector.extract_strided_slice %37 {offsets = [0, 0, 1, 0], sizes = [1, 4, 1, 16], strides = [1, 1, 1, 1]} : vector<1x4x16x16xf32> to vector<1x4x1x16xf32>
      %39 = vector.extract_strided_slice %37 {offsets = [0, 0, 0, 0], sizes = [1, 4, 15, 16], strides = [1, 1, 1, 1]} : vector<1x4x16x16xf32> to vector<1x4x15x16xf32>
      %40 = tpu.concatenate %38, %39 in 2 : vector<1x4x1x16xf32>, vector<1x4x15x16xf32> -> vector<1x4x16x16xf32>
      %41 = arith.addf %40, %37 : vector<1x4x16x16xf32>
      %42 = vector.extract_strided_slice %37 {offsets = [0, 0, 1, 0], sizes = [1, 4, 15, 16], strides = [1, 1, 1, 1]} : vector<1x4x16x16xf32> to vector<1x4x15x16xf32>
      %43 = vector.extract_strided_slice %37 {offsets = [0, 0, 14, 0], sizes = [1, 4, 1, 16], strides = [1, 1, 1, 1]} : vector<1x4x16x16xf32> to vector<1x4x1x16xf32>
      %44 = tpu.concatenate %42, %43 in 2 : vector<1x4x15x16xf32>, vector<1x4x1x16xf32> -> vector<1x4x16x16xf32>
      %45 = arith.addf %41, %44 : vector<1x4x16x16xf32>
      %cst = arith.constant 0.027777778 : f32
      %46 = vector.broadcast %cst : f32 to vector<1x4x16x16xf32>
      %47 = arith.mulf %45, %46 : vector<1x4x16x16xf32>
      %c0_10 = arith.constant 0 : index
      %c0_11 = arith.constant 0 : index
      %c0_12 = arith.constant 0 : index
      %c0_13 = arith.constant 0 : index
      %48 = vector.load %arg4[%c0_10, %c0_11, %c0_12, %c0_13] : memref<1x4x16x16xf32, #tpu.memory_space<vmem>>, vector<1x4x16x16xf32>
      tpu.vector_store %arg4[%c0_10, %c0_11, %c0_12, %c0_13], %47 {strides = array<i32>} : memref<1x4x16x16xf32, #tpu.memory_space<vmem>>, vector<1x4x16x16xf32>,
    } else {
    }
    return
  }
  func.func @transform_0(%arg0: i32, %arg1: memref<2xi32, #tpu.memory_space<smem>>, %arg2: memref<2xi32, #tpu.memory_space<smem>>) -> (i32, i32, i32, i32) {
    %c0_i32 = arith.constant 0 : i32
    %c0_i32_0 = arith.constant 0 : i32
    %c0_i32_1 = arith.constant 0 : i32
    %c0_i32_2 = arith.constant 0 : i32
    return %arg0, %c0_i32, %c0_i32_0, %c0_i32_1 : i32, i32, i32, i32
  }
  func.func @transform_1(%arg0: i32, %arg1: memref<2xi32, #tpu.memory_space<smem>>, %arg2: memref<2xi32, #tpu.memory_space<smem>>) -> (i32, i32, i32, i32) {
    %c0_i32 = arith.constant 0 : i32
    %c0_i32_0 = arith.constant 0 : i32
    %c0_i32_1 = arith.constant 0 : i32
    %c0_i32_2 = arith.constant 0 : i32
    return %arg0, %c0_i32, %c0_i32_0, %c0_i32_1 : i32, i32, i32, i32
  }
}

</mosaic_0001>

<bundles_post_ra>
// kernel: tpu_custom_call.1
= control target key start
LH: loop header
LB: loop body
LE: loop exit
PB: predicated region body
PF: predicated region fallthrough
CT: control target
= control target key end

     0   :  { %s1122_s12 = smov [#allocation3]   ;;  %s1655_s0 = inlined_call_operand.hbm [shape: s32[2], index: 0, kind: input, shape index: {}]   ;;  %s1656_s2 = inlined_call_operand.hbm [shape: f32[2,4,16,16], index: 2, kind: input, shape index: {}]   ;;  %s1657_s3 = inlined_call_operand.hbm [shape: f32[2,4,16,16], index: 3, kind: output, shape index: {}]   ;;  %s1658_s1 = inlined_call_operand.vmem [shape: s32[2], index: 1, kind: input, shape index: {}]  }
   0x1   :  { %9 = dma.hbm_to_smem %s1655_s0, 16, %s1122_s12, [#allocation2] }
   0x2   :  { %s10_s17 = sshll.u32 %s1658_s1, 4  ;;  %s11_s17 = int_to_ptr.vmem [resolvable:$true] %s10_s17 }
   0x3   :  { %s1014_s18 = scalar_lea.vmem %s11_s17, 16  ;;  %p1019_p1 = scmp.lt.s32.totalorder %s11_s17, %s11_s17 }
   0x4   :  { %p1015_p0 = scmp.ne.s32.totalorder %s11_s17, %s1014_s18  ;;  %p1020_p2 = scmp.lt.s32.totalorder %s1014_s18, %s1014_s18 }
   0x6   :  { %p1021_p3 = por %p1020_p2, %p1019_p1 }
   0x8   :  { %p1022_p4 = pnand %p1021_p3, %p1015_p0 }
   0xa   :  { %1025 = shalt.err (!%p1022_p4)  }
   0xb   :  { %s1123_s19 = smov [#allocation4]  }
   0xc   :  { %13 = dma.vmem_to_smem %s11_s17, 16, %s1123_s19, [#allocation2] }
   0xd   :  { %1096 = dma.done.wait [#allocation2], 32 }
   0xe   :  { %1097 = vsyncadd [#allocation2], 4294967264 }
   0xf   :  { %15 = sfence }
  0x10   :  { %16 = vsyncpa [#allocation6], 0 }
  0x11   :  { %18 = vsyncpa [#allocation6 + $0x1], 0 }
  0x12   :  { %19 = vsyncpa [#allocation7], 0 }
  0x13   :  { %21 = vsyncpa [#allocation7 + $0x1], 0  ;;  %s1162_s0 = smov 0   ;;  %s1164_s1 = smov 0  }
  0x14   :  { %s1166_s20 = smov 0   ;;  %s1168_s21 = smov 0  }
  0x15 LB: > { %s1183_s22 = sadd.s32 4294967295, %s1120_s21   ;;  %s932_s23 = sadd.s32 4294967294, %s1120_s21   ;;  %s1120_s21 = sphi %s1168_s21, %s1673_s21   ;;  %s1116_s20 = sphi %s1166_s20, %s1672_s20   ;;  %s1112_s1 = sphi %s1164_s1, %s1671_s1   ;;  %s1108_s0 = sphi %s1162_s0, %s1670_s0  }
  0x16   : > { %s1187_s24 = sadd.s32 1, %s1120_s21   ;;  %s34_s25 = sadd.s32 1, %s1116_s20 }
  0x17   : > { %s31_s26 = ssub.s32 %s1120_s21, %s1187_s24  ;;  %p41_p5 = scmp.ne.s32.totalorder %s1116_s20, %s1112_s1 }
  0x18   : > { %p32_p6 = scmp.eq.s32.totalorder %s31_s26, 0  ;;  %p42_p7 = scmp.eq.s32.totalorder %s1120_s21, 0 }
  0x19   : > { %p47_p8 = scmp.ne.s32.totalorder %s1112_s1, %s1108_s0  ;;  %p48_p9 = scmp.eq.s32.totalorder %s1183_s22, 0 }
  0x1a   : > { %s1199_s27 = scalar_select %p32_p6, %s1116_s20, %s34_s25  }
  0x1b   : > { %p1201_p10 = por %p42_p7, %p41_p5  ;;  %p1205_p11 = por %p48_p9, %p47_p8 }
  0x1c   : > { %p71_p12 = scmp.eq.s32.totalorder %s1183_s22, 1  ;;  %p77_p13 = scmp.eq.s32.totalorder %s932_s23, 1 }
  0x1d   : > { %s1662_s29 = scalar_select %p1205_p11, 1, 0 }
  0x1e   : > { %p960_p1 = scmp.lt.s32.totalorder %s1120_s21, 2  ;;  %p1212_p2 = por %p71_p12, %p41_p5 }
  0x1f   : > { %p1216_p3 = por %p77_p13, %p47_p8  ;;  %s97_s5 = sand.u32 1, %s1116_s20  }
  0x20   : > { %s1663_s30 = scalar_select %p1212_p2, 1, 0 }
  0x21   : > { %s1664_s4 = scalar_select %p1216_p3, 1, 0 }
  0x22   : > { %s946_s6 = sshll.u32 %s1120_s21, 10  ;;  %s935_s7 = sshll.u32 %s97_s5, 6 }
  0x23   : > { %s1225_s10 = scalar_lea.hbm %s1656_s2, %s946_s6  ;;  %s101_s11 = scalar_lea.vmem [#allocation5], %s935_s7 }
  0x24   : > { %s108_s12 = sshll.u32 %s101_s11, 4  ;;  %p1229_p4 = pnand %p960_p1, %p1201_p10  ;;  %s1233_s12 = int_to_ptr.vmem [resolvable:$true] %s108_s12 }
  0x25   : > { %s1235_s14 = scalar_lea.sflag [#allocation6], %s97_s5  ;;  %s1026_s15 = scalar_lea.hbm %s1225_s10, 1024 }
  0x26   : > { %p1027_p5 = scmp.ne.s32.totalorder %s1225_s10, %s1026_s15  ;;  %p1028_p6 = pneg %p1229_p4 }
  0x27   : > { %s1031_s18 = scalar_lea.hbm %s1656_s2, 2048  ;;  %p1032_p9 = scmp.lt.s32.totalorder %s1225_s10, %s1656_s2 }
  0x28   : > { %p1029_p7 = pnand %p1028_p6, %p1027_p5  ;;  %p1033_p10 = scmp.lt.s32.totalorder %s1031_s18, %s1026_s15 }
  0x2a   : > { %p1030_p8 = pneg %p1029_p7  ;;  %p1034_p12 = por %p1033_p10, %p1032_p9 }
  0x2c   : > { %p1035_p13 = pnand %p1034_p12, %p1030_p8 }
  0x2e   : > { %1038 = shalt.err (!%p1035_p13)
}
  0x2f   : > { %s1039_s25 = scalar_lea.vmem %s1233_s12, 1024  ;;  %s1124_s26 = smov [#allocation5]  }
  0x30   : > { %p1040_p1 = scmp.ne.s32.totalorder %s1233_s12, %s1039_s25  ;;  %s1044_s28 = sshll.u32 %s1124_s26, 4  ;;  %s1045_s28 = int_to_ptr.vmem [resolvable:$false] %s1044_s28 }
  0x31   : > { %s1046_s5 = scalar_lea.vmem %s1045_s28, 2048  ;;  %p1047_p7 = scmp.lt.s32.totalorder %s1233_s12, %s1045_s28 }
  0x32   : > { %p1042_p0 = pnand %p1040_p1, %p1028_p6  ;;  %p1048_p3 = scmp.lt.s32.totalorder %s1046_s5, %s1039_s25 }
  0x34   : > { %p1043_p5 = pneg %p1042_p0  ;;  %p1049_p2 = por %p1048_p3, %p1047_p7 }
  0x36   : > { %p1050_p11 = pnand %p1049_p2, %p1043_p5 }
  0x38   : > { %1053 = shalt.err (!%p1050_p11)
}
  0x39   : > { %s1125_s6 = smov 128   ;;  %s1126_s7 = smov 8  }
  0x3a   : > { %955 = dma.hbm_to_vmem [thread:$0]  (!%p1229_p4), %s1225_s10, 1024, %s1233_s12, %s1235_s14, %s1125_s6, %s1125_s6, %s1126_s7  }
  0x3b   : > { %p938_p0 = scmp.ge.s32.totalorder %s1120_s21, 1  ;;  %p116_p6 = scmp.lt.s32.totalorder %s1120_s21, 3 }
  0x3d   : > { %p117_p8 = pnand %p938_p0, %p116_p6 }
  0x3e   : > { %s1259_s8 = sand.u32 (!%p117_p8), 1, %s1112_s1   ;;  %p1666_p11 = scmp.ne.s32.totalorder (!%p117_p8), %s1662_s29, 0 }
  0x3f   : > { %120 = sbr.rel (%p117_p8) target bundleno = 760 (0x2f8), region = 24  ;;  %s939_s9 = sshll.u32 (!%p117_p8), %s1259_s8, 6 }
  0x40   : > { %s123_s11 = scalar_lea.sflag (!%p117_p8), [#allocation6], %s1259_s8  ;;  %s1263_s15 = scalar_lea.vmem (!%p117_p8), [#allocation5], %s939_s9 }
  0x44   : > { %1099 = dma.done.wait (%p1666_p11), %s123_s11, 1024  }
  0x45   : > { %1101 = vsyncadd (%p1666_p11), %s123_s11, 4294966272  ;;  %s1270_s10 = sld [smem:[#allocation3 + %s1183_s22]]  ;;  %s1281_s13 = scalar_lea.vmem [#allocation8], %s939_s9 }
  0x46   : > { %s1273_s12 = sld [smem:[#allocation4 + %s1183_s22]] }
  0x4b   : > { %p147_p2 = scmp.ne.s32.totalorder %s1270_s10, 0 }
  0x4c   : > { %p148_p3 = scmp.ne.s32.totalorder %s1273_s12, 0 }
  0x4e   : > { %p149_p4 = por %p148_p3, %p147_p2 }
  0x50   : > { %152 = sbr.rel (%p149_p4) target bundleno = 90 (0x5a), region = 32 }
  0x55   : > { %v153_v0 = vld [vmem:[%s1263_s15] sm:$0xff]  ;;  %vm161_vm0 = vcmask 130048   ;;  %v154_v1 = vld [vmem:[%s1263_s15 + $0x8] sm:$0xff]  ;;  %v155_v2 = vld [vmem:[%s1263_s15 + $0x10] sm:$0xff] }
  0x56   : > { %162 = vst.msk [vmem:[%s1281_s13] sm:$0xff] %vm161_vm0, %v153_v0  ;;  %163 = vst.msk [vmem:[%s1281_s13 + $0x8] sm:$0xff] %vm161_vm0, %v154_v1  ;;  %v156_v3 = vld [vmem:[%s1263_s15 + $0x18] sm:$0xff]  ;;  %v157_v4 = vld [vmem:[%s1263_s15 + $0x20] sm:$0xff] }
  0x57   : > { %164 = vst.msk [vmem:[%s1281_s13 + $0x10] sm:$0xff] %vm161_vm0, %v155_v2  ;;  %v158_v5 = vld [vmem:[%s1263_s15 + $0x28] sm:$0xff]  ;;  %165 = vst.msk [vmem:[%s1281_s13 + $0x18] sm:$0xff] %vm161_vm0, %v156_v3  ;;  %v159_v6 = vld [vmem:[%s1263_s15 + $0x30] sm:$0xff] }
  0x58   : > { %166 = vst.msk [vmem:[%s1281_s13 + $0x20] sm:$0xff] %vm161_vm0, %v157_v4  ;;  %167 = vst.msk [vmem:[%s1281_s13 + $0x28] sm:$0xff] %vm161_vm0, %v158_v5  ;;  %v160_v7 = vld [vmem:[%s1263_s15 + $0x38] sm:$0xff] }
  0x59   : > { %168 = vst.msk [vmem:[%s1281_s13 + $0x30] sm:$0xff] %vm161_vm0, %v159_v6  ;;  %169 = vst.msk [vmem:[%s1281_s13 + $0x38] sm:$0xff] %vm161_vm0, %v160_v7 }
  0x5a PF: > { %p170_p9 = scmp.eq.s32.totalorder %s1273_s12, 0 }
  0x5c   : > { %p171_p10 = pnand %p170_p9, %p147_p2 }
  0x5d   : > { %s1127_s29 = smov (!%p171_p10), 127   ;;  %s1128_s14 = smov (!%p171_p10), 1  }
  0x5e   : > { %174 = sbr.rel (%p171_p10) target bundleno = 254 (0xfe), region = 36 }
  0x63   : > { %v177_v8 = vld [vmem:[%s1263_s15 + $0x10] sm:$0xff]  ;;  %v175_v9 = vld [vmem:[%s1263_s15] sm:$0xff]  ;;  %v178_v10 = vld [vmem:[%s1263_s15 + $0x18] sm:$0xff]  ;;  %vm239_vm1 = vcmask 121856   ;;  %vm264_vm2 = vcmask 1046528   ;;  %vm313_vm3 = vcmask 130048  }
  0x64   : > { %195 = vrot.lane.b32.xlu1 %v177_v8, %s1127_s29  ;;  %191 = vrot.lane.b32.xlu0 %v175_v9, %s1127_s29  ;;  %v176_v11 = vld [vmem:[%s1263_s15 + $0x8] sm:$0xff]  ;;  %v179_v13 = vld [vmem:[%s1263_s15 + $0x20] sm:$0xff] }
  0x65   : > { %v180_v12 = vld [vmem:[%s1263_s15 + $0x28] sm:$0xff]  ;;  %v1309_v14 = vld [vmem:[%s1263_s15 + $0x38] sm:$0xff]  ;;  %v1312_v15 = vld [vmem:[%s1263_s15 + $0x30] sm:$0xff] }
  0x68   : > { %197 = vrot.lane.b32.xlu1 %v178_v10, %s1127_s29  ;;  %193 = vrot.lane.b32.xlu0 %v176_v11, %s1127_s29 }
  0x6c   : > { %201 = vrot.lane.b32.xlu1 %v180_v12, %s1127_s29  ;;  %199 = vrot.lane.b32.xlu0 %v179_v13, %s1127_s29 }
  0x70   : > { %205 = vrot.lane.b32.xlu1 %v1309_v14, %s1127_s29  ;;  %203 = vrot.lane.b32.xlu0 %v1312_v15, %s1127_s29 }
  0x74   : > { %217 = vrot.lane.b32.xlu1 %v176_v11, %s1128_s14  ;;  %215 = vrot.lane.b32.xlu0 %v175_v9, %s1128_s14 }
  0x78   : > { %221 = vrot.lane.b32.xlu1 %v178_v10, %s1128_s14  ;;  %219 = vrot.lane.b32.xlu0 %v177_v8, %s1128_s14 }
  0x7c   : > { %225 = vrot.lane.b32.xlu1 %v180_v12, %s1128_s14  ;;  %223 = vrot.lane.b32.xlu0 %v179_v13, %s1128_s14 }
  0x80   : > { %229 = vrot.lane.b32.xlu1 %v1309_v14, %s1128_s14  ;;  %227 = vrot.lane.b32.xlu0 %v1312_v15, %s1128_s14 }
  0xd6   : > { %v196_v16 = vpop.permute.xlu1 %195  ;;  %v192_v17 = vpop.permute.xlu0 %191 }
  0xda   : > { %v198_v18 = vpop.permute.xlu1 %197  ;;  %v194_v19 = vpop.permute.xlu0 %193 }
  0xde   : > { %v202_v20 = vpop.permute.xlu1 %201  ;;  %v200_v21 = vpop.permute.xlu0 %199 }
  0xe2   : > { %v206_v22 = vpop.permute.xlu1 %205  ;;  %v204_v23 = vpop.permute.xlu0 %203 }
  0xe6   : > { %v218_v24 = vpop.permute.xlu1 %217  ;;  %v216_v25 = vpop.permute.xlu0 %215 }
  0xe7   : > { %v241_v26 = vsel %vm239_vm1, %v194_v19, %v218_v24  ;;  %v240_v27 = vsel %vm239_vm1, %v192_v17, %v216_v25 }
  0xe8   : > { %v249_v28 = vadd.f32 %v241_v26, %v176_v11  ;;  %v248_v29 = vadd.f32 %v240_v27, %v175_v9 }
  0xea   : > { %v266_v30 = vrot.slane %v249_v28, 1  ;;  %v285_v31 = vrot.slane %v249_v28, 7  ;;  %v265_v32 = vrot.slane %v248_v29, 1  ;;  %v222_v33 = vpop.permute.xlu1 %221  ;;  %v220_v34 = vpop.permute.xlu0 %219 }
  0xeb   : > { %v243_v35 = vsel %vm239_vm1, %v198_v18, %v222_v33  ;;  %v242_v36 = vsel %vm239_vm1, %v196_v16, %v220_v34 }
  0xec   : > { %v293_v37 = vsel %vm264_vm2, %v266_v30, %v285_v31  ;;  %v267_v38 = vsel %vm264_vm2, %v265_v32, %v266_v30  ;;  %v251_v39 = vadd.f32 %v243_v35, %v178_v10  ;;  %v250_v40 = vadd.f32 %v242_v36, %v177_v8 }
  0xed   : > { %v298_v41 = vadd.f32 %v293_v37, %v249_v28  ;;  %v297_v42 = vadd.f32 %v267_v38, %v248_v29 }
  0xee   : > { %v269_v43 = vrot.slane %v251_v39, 1  ;;  %v286_v44 = vrot.slane %v251_v39, 7  ;;  %v268_v45 = vrot.slane %v250_v40, 1  ;;  %v226_v46 = vpop.permute.xlu1 %225  ;;  %v224_v47 = vpop.permute.xlu0 %223 }
  0xef   : > { %v306_v48 = vmul.f32 0.25, %v298_v41  ;;  %v305_v49 = vmul.f32 0.25, %v297_v42  ;;  %v245_v50 = vsel %vm239_vm1, %v202_v20, %v226_v46  ;;  %v244_v51 = vsel %vm239_vm1, %v200_v21, %v224_v47 }
  0xf0   : > { %v294_v52 = vsel %vm264_vm2, %v269_v43, %v286_v44  ;;  %v270_v53 = vsel %vm264_vm2, %v268_v45, %v269_v43  ;;  %v253_v54 = vadd.f32 %v245_v50, %v180_v12  ;;  %v252_v55 = vadd.f32 %v244_v51, %v179_v13 }
  0xf1   : > { %315 = vst.msk [vmem:[%s1281_s13 + $0x8] sm:$0xff] %vm313_vm3, %v306_v48  ;;  %314 = vst.msk [vmem:[%s1281_s13] sm:$0xff] %vm313_vm3, %v305_v49  ;;  %v300_v56 = vadd.f32 %v294_v52, %v251_v39  ;;  %v299_v57 = vadd.f32 %v270_v53, %v250_v40 }
  0xf2   : > { %v272_v58 = vrot.slane %v253_v54, 1  ;;  %v287_v59 = vrot.slane %v253_v54, 7  ;;  %v271_v60 = vrot.slane %v252_v55, 1  ;;  %v230_v61 = vpop.permute.xlu1 %229  ;;  %v228_v62 = vpop.permute.xlu0 %227 }
  0xf3   : > { %v308_v63 = vmul.f32 0.25, %v300_v56  ;;  %v307_v0 = vmul.f32 0.25, %v299_v57  ;;  %v247_v1 = vsel %vm239_vm1, %v206_v22, %v230_v61  ;;  %v246_v2 = vsel %vm239_vm1, %v204_v23, %v228_v62 }
  0xf4   : > { %v295_v3 = vsel %vm264_vm2, %v272_v58, %v287_v59  ;;  %v273_v4 = vsel %vm264_vm2, %v271_v60, %v272_v58  ;;  %v255_v5 = vadd.f32 %v247_v1, %v1309_v14  ;;  %v254_v6 = vadd.f32 %v246_v2, %v1312_v15 }
  0xf5   : > { %317 = vst.msk [vmem:[%s1281_s13 + $0x18] sm:$0xff] %vm313_vm3, %v308_v63  ;;  %316 = vst.msk [vmem:[%s1281_s13 + $0x10] sm:$0xff] %vm313_vm3, %v307_v0  ;;  %v302_v7 = vadd.f32 %v295_v3, %v253_v54  ;;  %v301_v8 = vadd.f32 %v273_v4, %v252_v55 }
  0xf6   : > { %v275_v9 = vrot.slane %v255_v5, 1  ;;  %v288_v10 = vrot.slane %v255_v5, 7  ;;  %v274_v11 = vrot.slane %v254_v6, 1 }
  0xf7   : > { %v310_v12 = vmul.f32 0.25, %v302_v7  ;;  %v309_v13 = vmul.f32 0.25, %v301_v8 }
  0xf8   : > { %v296_v16 = vsel %vm264_vm2, %v275_v9, %v288_v10  ;;  %v276_v17 = vsel %vm264_vm2, %v274_v11, %v275_v9 }
  0xf9   : > { %319 = vst.msk [vmem:[%s1281_s13 + $0x28] sm:$0xff] %vm313_vm3, %v310_v12  ;;  %318 = vst.msk [vmem:[%s1281_s13 + $0x20] sm:$0xff] %vm313_vm3, %v309_v13  ;;  %v304_v14 = vadd.f32 %v296_v16, %v255_v5  ;;  %v303_v15 = vadd.f32 %v276_v17, %v254_v6 }
  0xfb   : > { %v312_v18 = vmul.f32 0.25, %v304_v14  ;;  %v311_v19 = vmul.f32 0.25, %v303_v15 }
  0xfd   : > { %321 = vst.msk [vmem:[%s1281_s13 + $0x38] sm:$0xff] %vm313_vm3, %v312_v18  ;;  %320 = vst.msk [vmem:[%s1281_s13 + $0x30] sm:$0xff] %vm313_vm3, %v311_v19 }
  0xfe PF: > { %p322_p12 = scmp.eq.s32.totalorder %s1270_s10, 0 }
 0x100   : > { %p323_p13 = pnand %p322_p12, %p148_p3 }
 0x101   : > { %s1129_s16 = smov (!%p323_p13), 127   ;;  %s1130_s17 = smov (!%p323_p13), 1  }
 0x102   : > { %326 = sbr.rel (%p323_p13) target bundleno = 426 (0x1aa), region = 40 }
 0x107   : > { %v329_v20 = vld [vmem:[%s1263_s15 + $0x10] sm:$0xff]  ;;  %v327_v21 = vld [vmem:[%s1263_s15] sm:$0xff]  ;;  %v330_v22 = vld [vmem:[%s1263_s15 + $0x18] sm:$0xff]  ;;  %vm391_vm4 = vcmask 7168   ;;  %vm408_vm5 = vcmask 121856   ;;  %vm474_vm6 = vcmask 1046528  }
 0x108   : > { %347 = vrot.lane.b32.xlu1 %v329_v20, %s1129_s16  ;;  %343 = vrot.lane.b32.xlu0 %v327_v21, %s1129_s16  ;;  %v328_v23 = vld [vmem:[%s1263_s15 + $0x8] sm:$0xff]  ;;  %v1363_v25 = vld [vmem:[%s1263_s15 + $0x20] sm:$0xff]  ;;  %vm441_vm7 = vcmask 1040384   ;;  %vm515_vm8 = vcmask 130048  }
 0x109   : > { %v1360_v24 = vld [vmem:[%s1263_s15 + $0x28] sm:$0xff]  ;;  %v1368_v26 = vld [vmem:[%s1263_s15 + $0x38] sm:$0xff]  ;;  %v1371_v27 = vld [vmem:[%s1263_s15 + $0x30] sm:$0xff] }
 0x10c   : > { %349 = vrot.lane.b32.xlu1 %v330_v22, %s1129_s16  ;;  %345 = vrot.lane.b32.xlu0 %v328_v23, %s1129_s16 }
 0x110   : > { %353 = vrot.lane.b32.xlu1 %v1360_v24, %s1129_s16  ;;  %351 = vrot.lane.b32.xlu0 %v1363_v25, %s1129_s16 }
 0x114   : > { %357 = vrot.lane.b32.xlu1 %v1368_v26, %s1129_s16  ;;  %355 = vrot.lane.b32.xlu0 %v1371_v27, %s1129_s16 }
 0x118   : > { %369 = vrot.lane.b32.xlu1 %v328_v23, %s1130_s17  ;;  %367 = vrot.lane.b32.xlu0 %v327_v21, %s1130_s17 }
 0x11c   : > { %373 = vrot.lane.b32.xlu1 %v330_v22, %s1130_s17  ;;  %371 = vrot.lane.b32.xlu0 %v329_v20, %s1130_s17 }
 0x120   : > { %377 = vrot.lane.b32.xlu1 %v1360_v24, %s1130_s17  ;;  %375 = vrot.lane.b32.xlu0 %v1363_v25, %s1130_s17 }
 0x124   : > { %381 = vrot.lane.b32.xlu1 %v1368_v26, %s1130_s17  ;;  %379 = vrot.lane.b32.xlu0 %v1371_v27, %s1130_s17 }
 0x17a   : > { %v348_v28 = vpop.permute.xlu1 %347  ;;  %v344_v29 = vpop.permute.xlu0 %343 }
 0x17e   : > { %v350_v30 = vpop.permute.xlu1 %349  ;;  %v346_v31 = vpop.permute.xlu0 %345 }
 0x182   : > { %v354_v32 = vpop.permute.xlu1 %353  ;;  %v352_v33 = vpop.permute.xlu0 %351 }
 0x186   : > { %v1379_v34 = vpop.permute.xlu1 %357  ;;  %v1381_v35 = vpop.permute.xlu0 %355 }
 0x18a   : > { %v370_v36 = vpop.permute.xlu1 %369  ;;  %v368_v37 = vpop.permute.xlu0 %367 }
 0x18b   : > { %v393_v38 = vsel %vm391_vm4, %v346_v31, %v370_v36  ;;  %v392_v39 = vsel %vm391_vm4, %v344_v29, %v368_v37  ;;  %v410_v42 = vsel %vm408_vm5, %v346_v31, %v370_v36  ;;  %v409_v43 = vsel %vm408_vm5, %v344_v29, %v368_v37 }
 0x18c   : > { %v401_v40 = vadd.f32 %v393_v38, %v328_v23  ;;  %v400_v41 = vadd.f32 %v392_v39, %v327_v21 }
 0x18e   : > { %v418_v44 = vadd.f32 %v410_v42, %v401_v40  ;;  %v417_v45 = vadd.f32 %v409_v43, %v400_v41  ;;  %v374_v46 = vpop.permute.xlu1 %373  ;;  %v372_v47 = vpop.permute.xlu0 %371 }
 0x18f   : > { %v395_v48 = vsel %vm391_vm4, %v350_v30, %v374_v46  ;;  %v394_v49 = vsel %vm391_vm4, %v348_v28, %v372_v47  ;;  %v412_v55 = vsel %vm408_vm5, %v350_v30, %v374_v46  ;;  %v411_v57 = vsel %vm408_vm5, %v348_v28, %v372_v47 }
 0x190   : > { %v443_v50 = vrot.slane %v418_v44, 7  ;;  %v475_v51 = vrot.slane %v418_v44, 1  ;;  %v429_v52 = vrot.slane %v417_v45, 1  ;;  %v442_v53 = vrot.slane %v417_v45, 7 }
 0x191   : > { %v403_v54 = vadd.f32 %v395_v48, %v330_v22  ;;  %v402_v56 = vadd.f32 %v394_v49, %v329_v20 }
 0x192   : > { %v495_v58 = vsel %vm474_vm6, %v475_v51, %v443_v50  ;;  %v444_v59 = vsel %vm441_vm7, %v442_v53, %v443_v50  ;;  %v462_v60 = vsel %vm441_vm7, %v429_v52, %v442_v53  ;;  %v476_v61 = vsel %vm474_vm6, %v429_v52, %v475_v51  ;;  %v378_v62 = vpop.permute.xlu1 %377  ;;  %v376_v63 = vpop.permute.xlu0 %375 }
 0x193   : > { %v466_v0 = vadd.f32 %v462_v60, %v417_v45  ;;  %v467_v1 = vadd.f32 %v444_v59, %v418_v44  ;;  %v420_v2 = vadd.f32 %v412_v55, %v403_v54  ;;  %v419_v3 = vadd.f32 %v411_v57, %v402_v56 }
 0x194   : > { %v397_v4 = vsel %vm391_vm4, %v354_v32, %v378_v62  ;;  %v414_v5 = vsel %vm408_vm5, %v354_v32, %v378_v62  ;;  %v396_v6 = vsel %vm391_vm4, %v352_v33, %v376_v63  ;;  %v413_v7 = vsel %vm408_vm5, %v352_v33, %v376_v63 }
 0x195   : > { %v499_v8 = vadd.f32 %v476_v61, %v466_v0  ;;  %v500_v9 = vadd.f32 %v495_v58, %v467_v1  ;;  %v446_v10 = vrot.slane %v420_v2, 7  ;;  %v477_v11 = vrot.slane %v420_v2, 1 }
 0x196   : > { %v430_v12 = vrot.slane %v419_v3, 1  ;;  %v445_v13 = vrot.slane %v419_v3, 7  ;;  %v405_v16 = vadd.f32 %v397_v4, %v1360_v24  ;;  %v404_v17 = vadd.f32 %v396_v6, %v1363_v25  ;;  %v382_v14 = vpop.permute.xlu1 %381  ;;  %v380_v21 = vpop.permute.xlu0 %379 }
 0x197   : > { %v507_v15 = vmul.f32 0.11111111, %v499_v8  ;;  %v508_v18 = vmul.f32 0.11111111, %v500_v9  ;;  %v496_v19 = vsel %vm474_vm6, %v477_v11, %v446_v10  ;;  %v399_v20 = vsel %vm391_vm4, %v1379_v34, %v382_v14 }
 0x198   : > { %v447_v22 = vsel %vm441_vm7, %v445_v13, %v446_v10  ;;  %v463_v23 = vsel %vm441_vm7, %v430_v12, %v445_v13  ;;  %v478_v28 = vsel %vm474_vm6, %v430_v12, %v477_v11  ;;  %v422_v29 = vadd.f32 %v414_v5, %v405_v16 }
 0x199   : > { %516 = vst.msk [vmem:[%s1281_s13] sm:$0xff] %vm515_vm8, %v507_v15  ;;  %517 = vst.msk [vmem:[%s1281_s13 + $0x8] sm:$0xff] %vm515_vm8, %v508_v18  ;;  %v468_v24 = vadd.f32 %v463_v23, %v419_v3  ;;  %v469_v25 = vadd.f32 %v447_v22, %v420_v2  ;;  %v421_v30 = vadd.f32 %v413_v7, %v404_v17 }
 0x19a   : > { %v407_v31 = vadd.f32 %v399_v20, %v1368_v26  ;;  %v449_v32 = vrot.slane %v422_v29, 7  ;;  %v479_v33 = vrot.slane %v422_v29, 1  ;;  %v416_v36 = vsel %vm408_vm5, %v1379_v34, %v382_v14 }
 0x19b   : > { %v398_v37 = vsel %vm391_vm4, %v1381_v35, %v380_v21  ;;  %v501_v38 = vadd.f32 %v478_v28, %v468_v24  ;;  %v502_v39 = vadd.f32 %v496_v19, %v469_v25  ;;  %v431_v40 = vrot.slane %v421_v30, 1 }
 0x19c   : > { %v448_v41 = vrot.slane %v421_v30, 7  ;;  %v424_v42 = vadd.f32 %v416_v36, %v407_v31  ;;  %v406_v43 = vadd.f32 %v398_v37, %v1371_v27  ;;  %v415_v34 = vsel %vm408_vm5, %v1381_v35, %v380_v21 }
 0x19d   : > { %v509_v44 = vmul.f32 0.11111111, %v501_v38  ;;  %v510_v45 = vmul.f32 0.11111111, %v502_v39  ;;  %v497_v49 = vsel %vm474_vm6, %v479_v33, %v449_v32  ;;  %v480_v27 = vsel %vm474_vm6, %v431_v40, %v479_v33 }
 0x19e   : > { %v450_v26 = vsel %vm441_vm7, %v448_v41, %v449_v32  ;;  %v464_v46 = vsel %vm441_vm7, %v431_v40, %v448_v41  ;;  %v452_v50 = vrot.slane %v424_v42, 7  ;;  %v423_v51 = vadd.f32 %v415_v34, %v406_v43 }
 0x19f   : > { %v470_v47 = vadd.f32 %v464_v46, %v421_v30  ;;  %v471_v48 = vadd.f32 %v450_v26, %v422_v29  ;;  %518 = vst.msk [vmem:[%s1281_s13 + $0x10] sm:$0xff] %vm515_vm8, %v509_v44  ;;  %519 = vst.msk [vmem:[%s1281_s13 + $0x18] sm:$0xff] %vm515_vm8, %v510_v45  ;;  %v481_v54 = vrot.slane %v424_v42, 1 }
 0x1a0   : > { %v432_v55 = vrot.slane %v423_v51, 1  ;;  %v451_v56 = vrot.slane %v423_v51, 7 }
 0x1a1   : > { %v503_v52 = vadd.f32 %v480_v27, %v470_v47  ;;  %v504_v53 = vadd.f32 %v497_v49, %v471_v48  ;;  %v498_v62 = vsel %vm474_vm6, %v481_v54, %v452_v50 }
 0x1a2   : > { %v453_v58 = vsel %vm441_vm7, %v451_v56, %v452_v50  ;;  %v465_v59 = vsel %vm441_vm7, %v432_v55, %v451_v56  ;;  %v482_v63 = vsel %vm474_vm6, %v432_v55, %v481_v54 }
 0x1a3   : > { %v511_v35 = vmul.f32 0.11111111, %v503_v52  ;;  %v512_v57 = vmul.f32 0.11111111, %v504_v53  ;;  %v472_v60 = vadd.f32 %v465_v59, %v423_v51  ;;  %v473_v61 = vadd.f32 %v453_v58, %v424_v42 }
 0x1a5   : > { %520 = vst.msk [vmem:[%s1281_s13 + $0x20] sm:$0xff] %vm515_vm8, %v511_v35  ;;  %521 = vst.msk [vmem:[%s1281_s13 + $0x28] sm:$0xff] %vm515_vm8, %v512_v57  ;;  %v505_v0 = vadd.f32 %v482_v63, %v472_v60  ;;  %v506_v1 = vadd.f32 %v498_v62, %v473_v61 }
 0x1a7   : > { %v513_v2 = vmul.f32 0.11111111, %v505_v0  ;;  %v514_v3 = vmul.f32 0.11111111, %v506_v1 }
 0x1a9   : > { %522 = vst.msk [vmem:[%s1281_s13 + $0x30] sm:$0xff] %vm515_vm8, %v513_v2  ;;  %523 = vst.msk [vmem:[%s1281_s13 + $0x38] sm:$0xff] %vm515_vm8, %v514_v3 }
 0x1aa PF: > { %p524_p1 = pnand %p148_p3, %p147_p2 }
 0x1ab   : > { %s1131_s18 = smov (!%p524_p1), 127   ;;  %s1132_s19 = smov (!%p524_p1), 1  }
 0x1ac   : > { %527 = sbr.rel (%p524_p1) target bundleno = 735 (0x2df), region = 44 }
 0x1b1   : > { %v530_v4 = vld [vmem:[%s1263_s15 + $0x10] sm:$0xff]  ;;  %v528_v5 = vld [vmem:[%s1263_s15] sm:$0xff]  ;;  %v531_v6 = vld [vmem:[%s1263_s15 + $0x18] sm:$0xff]  ;;  %vm592_vm9 = vcmask 121856   ;;  %vm617_vm10 = vcmask 1046528   ;;  %vm714_vm11 = vcmask 7168  }
 0x1b2   : > { %548 = vrot.lane.b32.xlu1 %v530_v4, %s1131_s18  ;;  %544 = vrot.lane.b32.xlu0 %v528_v5, %s1131_s18  ;;  %v529_v7 = vld [vmem:[%s1263_s15 + $0x8] sm:$0xff]  ;;  %v532_v9 = vld [vmem:[%s1263_s15 + $0x20] sm:$0xff]  ;;  %vm763_vm12 = vcmask 1040384   ;;  %vm836_vm13 = vcmask 130048  }
 0x1b3   : > { %v533_v8 = vld [vmem:[%s1263_s15 + $0x28] sm:$0xff]  ;;  %v1456_v10 = vld [vmem:[%s1263_s15 + $0x38] sm:$0xff]  ;;  %v1459_v11 = vld [vmem:[%s1263_s15 + $0x30] sm:$0xff] }
 0x1b6   : > { %550 = vrot.lane.b32.xlu1 %v531_v6, %s1131_s18  ;;  %546 = vrot.lane.b32.xlu0 %v529_v7, %s1131_s18 }
 0x1ba   : > { %554 = vrot.lane.b32.xlu1 %v533_v8, %s1131_s18  ;;  %552 = vrot.lane.b32.xlu0 %v532_v9, %s1131_s18 }
 0x1be   : > { %558 = vrot.lane.b32.xlu1 %v1456_v10, %s1131_s18  ;;  %556 = vrot.lane.b32.xlu0 %v1459_v11, %s1131_s18 }
 0x1c2   : > { %570 = vrot.lane.b32.xlu1 %v529_v7, %s1132_s19  ;;  %568 = vrot.lane.b32.xlu0 %v528_v5, %s1132_s19 }
 0x1c6   : > { %574 = vrot.lane.b32.xlu1 %v531_v6, %s1132_s19  ;;  %572 = vrot.lane.b32.xlu0 %v530_v4, %s1132_s19 }
 0x1ca   : > { %578 = vrot.lane.b32.xlu1 %v533_v8, %s1132_s19  ;;  %576 = vrot.lane.b32.xlu0 %v532_v9, %s1132_s19 }
 0x1ce   : > { %582 = vrot.lane.b32.xlu1 %v1456_v10, %s1132_s19  ;;  %580 = vrot.lane.b32.xlu0 %v1459_v11, %s1132_s19 }
 0x224   : > { %v549_v12 = vpop.permute.xlu1 %548  ;;  %v545_v13 = vpop.permute.xlu0 %544 }
 0x228   : > { %v551_v16 = vpop.permute.xlu1 %550  ;;  %v547_v17 = vpop.permute.xlu0 %546 }
 0x22c   : > { %v555_v14 = vpop.permute.xlu1 %554  ;;  %v553_v15 = vpop.permute.xlu0 %552 }
 0x230   : > { %v559_v18 = vpop.permute.xlu1 %558  ;;  %v557_v19 = vpop.permute.xlu0 %556 }
 0x234   : > { %v571_v20 = vpop.permute.xlu1 %570  ;;  %v569_v21 = vpop.permute.xlu0 %568 }
 0x235   : > { %v594_v22 = vsel %vm592_vm9, %v547_v17, %v571_v20  ;;  %v593_v23 = vsel %vm592_vm9, %v545_v13, %v569_v21 }
 0x236   : > { %v602_v28 = vadd.f32 %v594_v22, %v529_v7  ;;  %v601_v29 = vadd.f32 %v593_v23, %v528_v5 }
 0x238   : > { %v619_v24 = vrot.slane %v602_v28, 1  ;;  %v638_v25 = vrot.slane %v602_v28, 7  ;;  %v618_v30 = vrot.slane %v601_v29, 1  ;;  %v575_v31 = vpop.permute.xlu1 %574  ;;  %v573_v32 = vpop.permute.xlu0 %572 }
 0x239   : > { %v596_v33 = vsel %vm592_vm9, %v551_v16, %v575_v31  ;;  %v595_v36 = vsel %vm592_vm9, %v549_v12, %v573_v32 }
 0x23a   : > { %v604_v37 = vadd.f32 %v596_v33, %v531_v6  ;;  %v603_v38 = vadd.f32 %v595_v36, %v530_v4  ;;  %v646_v39 = vsel %vm617_vm10, %v619_v24, %v638_v25  ;;  %v620_v40 = vsel %vm617_vm10, %v618_v30, %v619_v24 }
 0x23b   : > { %v1481_v41 = vadd.f32 %v646_v39, %v602_v28  ;;  %v1483_v42 = vadd.f32 %v620_v40, %v601_v29 }
 0x23c   : > { %v622_v43 = vrot.slane %v604_v37, 1  ;;  %v639_v44 = vrot.slane %v604_v37, 7  ;;  %v621_v45 = vrot.slane %v603_v38, 1  ;;  %v579_v26 = vpop.permute.xlu1 %578  ;;  %v577_v46 = vpop.permute.xlu0 %576 }
 0x23d   : > { %v598_v47 = vsel %vm592_vm9, %v555_v14, %v579_v26  ;;  %v597_v48 = vsel %vm592_vm9, %v553_v15, %v577_v46  ;;  %668 = vrot.lane.b32.xlu1 %v1481_v41, %s1131_s18  ;;  %666 = vrot.lane.b32.xlu0 %v1483_v42, %s1131_s18 }
 0x23e   : > { %v606_v34 = vadd.f32 %v598_v47, %v533_v8  ;;  %v605_v49 = vadd.f32 %v597_v48, %v532_v9  ;;  %v647_v27 = vsel %vm617_vm10, %v622_v43, %v639_v44  ;;  %v623_v50 = vsel %vm617_vm10, %v621_v45, %v622_v43 }
 0x23f   : > { %v1493_v51 = vadd.f32 %v647_v27, %v604_v37  ;;  %v1495_v52 = vadd.f32 %v623_v50, %v603_v38 }
 0x240   : > { %v625_v53 = vrot.slane %v606_v34, 1  ;;  %v640_v54 = vrot.slane %v606_v34, 7  ;;  %v624_v55 = vrot.slane %v605_v49, 1  ;;  %v583_v56 = vpop.permute.xlu1 %582  ;;  %v581_v35 = vpop.permute.xlu0 %580 }
 0x241   : > { %v600_v57 = vsel %vm592_vm9, %v559_v18, %v583_v56  ;;  %v599_v58 = vsel %vm592_vm9, %v557_v19, %v581_v35  ;;  %672 = vrot.lane.b32.xlu1 %v1493_v51, %s1131_s18  ;;  %670 = vrot.lane.b32.xlu0 %v1495_v52, %s1131_s18 }
 0x242   : > { %v608_v59 = vadd.f32 %v600_v57, %v1456_v10  ;;  %v607_v60 = vadd.f32 %v599_v58, %v1459_v11  ;;  %v648_v61 = vsel %vm617_vm10, %v625_v53, %v640_v54  ;;  %v626_v62 = vsel %vm617_vm10, %v624_v55, %v625_v53 }
 0x243   : > { %v1507_v63 = vadd.f32 %v648_v61, %v606_v34  ;;  %v1509_v0 = vadd.f32 %v626_v62, %v605_v49 }
 0x244   : > { %v628_v1 = vrot.slane %v608_v59, 1  ;;  %v641_v2 = vrot.slane %v608_v59, 7  ;;  %v627_v3 = vrot.slane %v607_v60, 1 }
 0x245   : > { %676 = vrot.lane.b32.xlu1 %v1507_v63, %s1131_s18  ;;  %674 = vrot.lane.b32.xlu0 %v1509_v0, %s1131_s18 }
 0x246   : > { %v649_v4 = vsel %vm617_vm10, %v628_v1, %v641_v2  ;;  %v629_v5 = vsel %vm617_vm10, %v627_v3, %v628_v1 }
 0x247   : > { %v1517_v6 = vadd.f32 %v649_v4, %v608_v59  ;;  %v1519_v7 = vadd.f32 %v629_v5, %v607_v60 }
 0x249   : > { %680 = vrot.lane.b32.xlu1 %v1517_v6, %s1131_s18  ;;  %678 = vrot.lane.b32.xlu0 %v1519_v7, %s1131_s18 }
 0x24d   : > { %692 = vrot.lane.b32.xlu1 %v1481_v41, %s1132_s19  ;;  %690 = vrot.lane.b32.xlu0 %v1483_v42, %s1132_s19 }
 0x251   : > { %696 = vrot.lane.b32.xlu1 %v1493_v51, %s1132_s19  ;;  %694 = vrot.lane.b32.xlu0 %v1495_v52, %s1132_s19 }
 0x255   : > { %700 = vrot.lane.b32.xlu1 %v1507_v63, %s1132_s19  ;;  %698 = vrot.lane.b32.xlu0 %v1509_v0, %s1132_s19 }
 0x259   : > { %704 = vrot.lane.b32.xlu1 %v1517_v6, %s1132_s19  ;;  %702 = vrot.lane.b32.xlu0 %v1519_v7, %s1132_s19 }
 0x2af   : > { %v669_v8 = vpop.permute.xlu1 %668  ;;  %v667_v9 = vpop.permute.xlu0 %666 }
 0x2b3   : > { %v673_v10 = vpop.permute.xlu1 %672  ;;  %v671_v11 = vpop.permute.xlu0 %670 }
 0x2b7   : > { %v677_v12 = vpop.permute.xlu1 %676  ;;  %v675_v13 = vpop.permute.xlu0 %674 }
 0x2bb   : > { %v1541_v16 = vpop.permute.xlu1 %680  ;;  %v1543_v17 = vpop.permute.xlu0 %678 }
 0x2bf   : > { %v693_v14 = vpop.permute.xlu1 %692  ;;  %v691_v15 = vpop.permute.xlu0 %690 }
 0x2c0   : > { %v716_v18 = vsel %vm714_vm11, %v669_v8, %v693_v14  ;;  %v715_v19 = vsel %vm714_vm11, %v667_v9, %v691_v15  ;;  %v732_v22 = vsel %vm592_vm9, %v669_v8, %v693_v14  ;;  %v731_v23 = vsel %vm592_vm9, %v667_v9, %v691_v15 }
 0x2c1   : > { %v724_v20 = vadd.f32 %v716_v18, %v1481_v41  ;;  %v723_v21 = vadd.f32 %v715_v19, %v1483_v42 }
 0x2c3   : > { %v740_v28 = vadd.f32 %v732_v22, %v724_v20  ;;  %v739_v29 = vadd.f32 %v731_v23, %v723_v21  ;;  %v697_v24 = vpop.permute.xlu1 %696  ;;  %v695_v25 = vpop.permute.xlu0 %694 }
 0x2c4   : > { %v718_v30 = vsel %vm714_vm11, %v673_v10, %v697_v24  ;;  %v717_v31 = vsel %vm714_vm11, %v671_v11, %v695_v25  ;;  %v734_v39 = vsel %vm592_vm9, %v673_v10, %v697_v24  ;;  %v733_v41 = vsel %vm592_vm9, %v671_v11, %v695_v25 }
 0x2c5   : > { %v765_v32 = vrot.slane %v740_v28, 7  ;;  %v796_v33 = vrot.slane %v740_v28, 1  ;;  %v751_v36 = vrot.slane %v739_v29, 1  ;;  %v764_v37 = vrot.slane %v739_v29, 7 }
 0x2c6   : > { %v726_v38 = vadd.f32 %v718_v30, %v1493_v51  ;;  %v725_v40 = vadd.f32 %v717_v31, %v1495_v52 }
 0x2c7   : > { %v816_v42 = vsel %vm617_vm10, %v796_v33, %v765_v32  ;;  %v766_v43 = vsel %vm763_vm12, %v764_v37, %v765_v32  ;;  %v784_v44 = vsel %vm763_vm12, %v751_v36, %v764_v37  ;;  %v797_v45 = vsel %vm617_vm10, %v751_v36, %v796_v33  ;;  %v701_v26 = vpop.permute.xlu1 %700  ;;  %v699_v46 = vpop.permute.xlu0 %698 }
 0x2c8   : > { %v788_v47 = vadd.f32 %v784_v44, %v739_v29  ;;  %v789_v48 = vadd.f32 %v766_v43, %v740_v28  ;;  %v742_v34 = vadd.f32 %v734_v39, %v726_v38  ;;  %v741_v49 = vadd.f32 %v733_v41, %v725_v40 }
 0x2c9   : > { %v720_v27 = vsel %vm714_vm11, %v677_v12, %v701_v26  ;;  %v736_v50 = vsel %vm592_vm9, %v677_v12, %v701_v26  ;;  %v719_v51 = vsel %vm714_vm11, %v675_v13, %v699_v46  ;;  %v735_v52 = vsel %vm592_vm9, %v675_v13, %v699_v46 }
 0x2ca   : > { %v820_v53 = vadd.f32 %v797_v45, %v788_v47  ;;  %v821_v54 = vadd.f32 %v816_v42, %v789_v48  ;;  %v768_v55 = vrot.slane %v742_v34, 7  ;;  %v798_v56 = vrot.slane %v742_v34, 1 }
 0x2cb   : > { %v752_v35 = vrot.slane %v741_v49, 1  ;;  %v767_v57 = vrot.slane %v741_v49, 7  ;;  %v728_v58 = vadd.f32 %v720_v27, %v1507_v63  ;;  %v727_v59 = vadd.f32 %v719_v51, %v1509_v0  ;;  %v705_v60 = vpop.permute.xlu1 %704  ;;  %v703_v3 = vpop.permute.xlu0 %702 }
 0x2cc   : > { %v828_v61 = vmul.f32 0.027777778, %v820_v53  ;;  %v829_v62 = vmul.f32 0.027777778, %v821_v54  ;;  %v817_v1 = vsel %vm617_vm10, %v798_v56, %v768_v55  ;;  %v722_v2 = vsel %vm714_vm11, %v1541_v16, %v705_v60 }
 0x2cd   : > { %v769_v4 = vsel %vm763_vm12, %v767_v57, %v768_v55  ;;  %v785_v5 = vsel %vm763_vm12, %v752_v35, %v767_v57  ;;  %v799_v8 = vsel %vm617_vm10, %v752_v35, %v798_v56  ;;  %v744_v9 = vadd.f32 %v736_v50, %v728_v58 }
 0x2ce   : > { %837 = vst.msk [vmem:[%s1281_s13] sm:$0xff] %vm836_vm13, %v828_v61  ;;  %838 = vst.msk [vmem:[%s1281_s13 + $0x8] sm:$0xff] %vm836_vm13, %v829_v62  ;;  %v790_v63 = vadd.f32 %v785_v5, %v741_v49  ;;  %v791_v0 = vadd.f32 %v769_v4, %v742_v34  ;;  %v743_v10 = vadd.f32 %v735_v52, %v727_v59 }
 0x2cf   : > { %v730_v11 = vadd.f32 %v722_v2, %v1517_v6  ;;  %v771_v12 = vrot.slane %v744_v9, 7  ;;  %v800_v13 = vrot.slane %v744_v9, 1  ;;  %v738_v14 = vsel %vm592_vm9, %v1541_v16, %v705_v60 }
 0x2d0   : > { %v721_v15 = vsel %vm714_vm11, %v1543_v17, %v703_v3  ;;  %v822_v18 = vadd.f32 %v799_v8, %v790_v63  ;;  %v823_v19 = vadd.f32 %v817_v1, %v791_v0  ;;  %v753_v20 = vrot.slane %v743_v10, 1 }
 0x2d1   : > { %v770_v21 = vrot.slane %v743_v10, 7  ;;  %v746_v22 = vadd.f32 %v738_v14, %v730_v11  ;;  %v729_v23 = vadd.f32 %v721_v15, %v1519_v7  ;;  %v737_v16 = vsel %vm592_vm9, %v1543_v17, %v703_v3 }
 0x2d2   : > { %v830_v28 = vmul.f32 0.027777778, %v822_v18  ;;  %v831_v29 = vmul.f32 0.027777778, %v823_v19  ;;  %v818_v31 = vsel %vm617_vm10, %v800_v13, %v771_v12  ;;  %v801_v7 = vsel %vm617_vm10, %v753_v20, %v800_v13 }
 0x2d3   : > { %v772_v6 = vsel %vm763_vm12, %v770_v21, %v771_v12  ;;  %v786_v24 = vsel %vm763_vm12, %v753_v20, %v770_v21  ;;  %v774_v32 = vrot.slane %v746_v22, 7  ;;  %v745_v33 = vadd.f32 %v737_v16, %v729_v23 }
 0x2d4   : > { %v792_v25 = vadd.f32 %v786_v24, %v743_v10  ;;  %v793_v30 = vadd.f32 %v772_v6, %v744_v9  ;;  %839 = vst.msk [vmem:[%s1281_s13 + $0x10] sm:$0xff] %vm836_vm13, %v830_v28  ;;  %840 = vst.msk [vmem:[%s1281_s13 + $0x18] sm:$0xff] %vm836_vm13, %v831_v29  ;;  %v802_v38 = vrot.slane %v746_v22, 1 }
 0x2d5   : > { %v754_v39 = vrot.slane %v745_v33, 1  ;;  %v773_v40 = vrot.slane %v745_v33, 7 }
 0x2d6   : > { %v824_v36 = vadd.f32 %v801_v7, %v792_v25  ;;  %v825_v37 = vadd.f32 %v818_v31, %v793_v30  ;;  %v819_v26 = vsel %vm617_vm10, %v802_v38, %v774_v32 }
 0x2d7   : > { %v775_v42 = vsel %vm763_vm12, %v773_v40, %v774_v32  ;;  %v787_v43 = vsel %vm763_vm12, %v754_v39, %v773_v40  ;;  %v803_v46 = vsel %vm617_vm10, %v754_v39, %v802_v38 }
 0x2d8   : > { %v832_v17 = vmul.f32 0.027777778, %v824_v36  ;;  %v833_v41 = vmul.f32 0.027777778, %v825_v37  ;;  %v794_v44 = vadd.f32 %v787_v43, %v745_v33  ;;  %v795_v45 = vadd.f32 %v775_v42, %v746_v22 }
 0x2da   : > { %841 = vst.msk [vmem:[%s1281_s13 + $0x20] sm:$0xff] %vm836_vm13, %v832_v17  ;;  %842 = vst.msk [vmem:[%s1281_s13 + $0x28] sm:$0xff] %vm836_vm13, %v833_v41  ;;  %v826_v47 = vadd.f32 %v803_v46, %v794_v44  ;;  %v827_v48 = vadd.f32 %v819_v26, %v795_v45 }
 0x2dc   : > { %v834_v34 = vmul.f32 0.027777778, %v826_v47  ;;  %v835_v49 = vmul.f32 0.027777778, %v827_v48 }
 0x2de   : > { %843 = vst.msk [vmem:[%s1281_s13 + $0x30] sm:$0xff] %vm836_vm13, %v834_v34  ;;  %844 = vst.msk [vmem:[%s1281_s13 + $0x38] sm:$0xff] %vm836_vm13, %v835_v49 }
 0x2df PF: > { %s947_s23 = sshll.u32 %s1183_s22, 10  ;;  %s859_s5 = sshll.u32 %s1281_s13, 4  ;;  %s1612_s5 = int_to_ptr.vmem [resolvable:$true] %s859_s5 }
 0x2e0   : > { %s1609_s28 = scalar_lea.hbm %s1657_s3, %s947_s23  ;;  %s846_s6 = scalar_lea.sflag [#allocation7], %s1259_s8 }
 0x2e1   : > { %s1054_s7 = scalar_lea.vmem %s1612_s5, 1024  ;;  %p1667_p7 = scmp.ne.s32.totalorder %s1663_s30, 0 }
 0x2e2   : > { %p1055_p5 = scmp.ne.s32.totalorder %s1612_s5, %s1054_s7  ;;  %s1133_s9 = smov [#allocation8]  }
 0x2e3   : > { %s1058_s11 = sshll.u32 %s1133_s9, 4  ;;  %s1059_s11 = int_to_ptr.vmem [resolvable:$false] %s1058_s11 }
 0x2e4   : > { %p1056_p0 = pnand %p1055_p5, %p1667_p7  ;;  %s1060_s22 = scalar_lea.vmem %s1059_s11, 2048 }
 0x2e5   : > { %p1061_p8 = scmp.lt.s32.totalorder %s1612_s5, %s1059_s11  ;;  %p1062_p11 = scmp.lt.s32.totalorder %s1060_s22, %s1054_s7 }
 0x2e6   : > { %p1057_p6 = pneg %p1056_p0 }
 0x2e7   : > { %p1063_p2 = por %p1062_p11, %p1061_p8 }
 0x2e9   : > { %p1064_p3 = pnand %p1063_p2, %p1057_p6 }
 0x2eb   : > { %1067 = shalt.err (!%p1064_p3)
}
 0x2ec   : > { %s1068_s15 = scalar_lea.hbm %s1609_s28, 1024  ;;  %s1072_s13 = scalar_lea.hbm %s1657_s3, 2048 }
 0x2ed   : > { %p1069_p4 = scmp.ne.s32.totalorder %s1609_s28, %s1068_s15  ;;  %p1073_p12 = scmp.lt.s32.totalorder %s1609_s28, %s1657_s3 }
 0x2ee   : > { %p1074_p13 = scmp.lt.s32.totalorder %s1072_s13, %s1068_s15 }
 0x2ef   : > { %p1070_p9 = pnand %p1069_p4, %p1667_p7 }
 0x2f0   : > { %p1075_p1 = por %p1074_p13, %p1073_p12 }
 0x2f1   : > { %p1071_p10 = pneg %p1070_p9 }
 0x2f3   : > { %p1076_p5 = pnand %p1075_p1, %p1071_p10 }
 0x2f5   : > { %1079 = shalt.err (!%p1076_p5)
}
 0x2f6   : > { %s1134_s16 = smov 128   ;;  %s1135_s17 = smov 8  }
 0x2f7   : > { %950 = dma.vmem_to_hbm [thread:$0]  (%p1667_p7), %s1612_s5, 1024, %s1609_s28, %s846_s6, %s1134_s16, %s1134_s16, %s1135_s17  }
 0x2f8 PF: > { %s874_s18 = sand.u32 1, %s1108_s0   ;;  %p1668_p0 = scmp.ne.s32.totalorder %s1664_s4, 0 }
 0x2f9   : > { %p1669_p6 = scmp.ge.s32.totalorder %s1120_s21, 2  ;;  %s875_s19 = scalar_lea.sflag [#allocation7], %s874_s18 }
 0x2fb   : > { %p957_p8 = pnand %p1669_p6, %p1668_p0 }
 0x2fd   : > { %p958_p11 = pneg %p957_p8 }
 0x2ff   : > { %1103 = dma.done.wait (%p958_p11), %s875_s19, 1024  }
 0x300   : > { %1105 = vsyncadd (%p958_p11), %s875_s19, 4294966272  ;;  %p24_p2 = scmp.ge.s32.totalorder %s1187_s24, 4   ;;  %s1670_s0 = smov %s1112_s1 }
 0x301   : > { %s1671_s1 = smov %s1116_s20  ;;  %s1672_s20 = smov %s1199_s27 }
 0x302   : > { %s1673_s21 = smov %s1187_s24  ;;  %26 = sbr.rel (!%p24_p2) target bundleno = 21 (0x15), region = 85 }
 0x307   :  { %880 = vsyncpa [#allocation6], 1 }
 0x308   :  { %882 = vsyncpa [#allocation6 + $0x1], 1 }
 0x309   :  { %883 = vsyncpa [#allocation7], 1 }
 0x30a   :  { %885 = vsyncpa [#allocation7 + $0x1], 1 }

</bundles_post_ra>
